<compile_context>
chip_gen: v5e
topology: v5e:2x2
jax: 0.10.0
libtpu: 0.0.40
codegen_flags: <defaults>
</compile_context>

<pallas_src>
import jax
import jax.numpy as jnp
from jax.experimental import pallas as pl
from jax.experimental.pallas import tpu as pltpu

_LANE = 128      # vreg lane width (all TPU generations)
_SUBLANE = 8     # f32 sublane count


def _round_up(x, mult):
    return ((x + mult - 1) // mult) * mult


def _apply_activation(h, name):
    if name == "identity":
        return h
    if name == "relu":
        return jnp.maximum(h, 0.0)
    if name == "tanh":
        return jnp.tanh(h)
    if name == "sigmoid":
        return jax.nn.sigmoid(h)
    # TODO(synk): arbitrary torch activation callables can't be passed through;
    # only a small named set of activations is supported in-kernel.
    raise ValueError(f"unsupported activation: {name}")


def _make_mlp_kernel(num_layers, activation, activation_after_last_layer):
    def kernel(x_ref, *refs):
        # refs = (w0, b0, w1, b1, ..., w_{L-1}, b_{L-1}, out_ref)
        out_ref = refs[-1]
        params = refs[:-1]
        h = x_ref[...]
        for li in range(num_layers):
            w = params[2 * li][...]        # (in_pad, out_pad), native/compute dtype
            b = params[2 * li + 1][...]    # (1, out_pad)
            # MXU gets native-dtype operands; accumulation is f32.  Activations
            # are cast to the weight dtype (explicit compute_dtype choice made
            # wrapper-side, documented in mlp_forward).
            h = jnp.dot(h.astype(w.dtype), w, preferred_element_type=jnp.float32)
            h = h + b.astype(jnp.float32)
            if li < num_layers - 1 or activation_after_last_layer:
                # Zero-padded rows/columns flow through the activation.  This is
                # exact for any activation finite at 0 because the padded K rows
                # of the next layer's weight are zero.
                h = _apply_activation(h, activation)
        out_ref[...] = h.astype(out_ref.dtype)

    return kernel


def _vmem_capacity_bytes():
    """Physical VMEM per TensorCore (v5e/v6e: 128 MiB, v7x: 64 MiB)."""
    try:
        cap = getattr(pltpu.get_tpu_info(), "vmem_capacity_bytes", None)
        if cap:
            return int(cap)
    except Exception:
        pass
    return 64 * 1024 * 1024   # conservative fallback (v7x per-TC size)


def _choose_row_budget(in_features, padded_dims, act_itemsize, weight_bytes,
                       vmem_budget_bytes):
    """Largest row tile keeping double-buffered activation tiles + f32
    intermediates + resident (padded) weights under the VMEM budget."""
    max_width = max(padded_dims)
    bytes_per_row = (2 * in_features * act_itemsize          # double-buffered x
                     + 2 * padded_dims[-1] * act_itemsize    # double-buffered y
                     + 4 * max_width * 4)                    # f32 intermediates headroom
    avail = max(vmem_budget_bytes - weight_bytes, _SUBLANE * bytes_per_row)
    tm = max(_SUBLANE, int(avail // bytes_per_row))
    if tm >= _LANE:
        tm = (tm // _LANE) * _LANE
    else:
        tm = (tm // _SUBLANE) * _SUBLANE
    return max(tm, _SUBLANE)


def _pick_row_tile(m, tm_budget):
    """Return (tm, m_pad): row tile + padded row count, preferring tiles that
    divide m exactly (no jnp.pad HBM pass) when within ~12% of the budget."""
    m_aligned = _round_up(m, _SUBLANE)
    # v7x has 2 TensorCores; make sure the "parallel" batch axis has >= 2 blocks
    # whenever the problem is big enough to shard.
    if m_aligned >= 2 * _LANE:
        tm_budget = min(tm_budget, _round_up(-(-m_aligned // 2), _SUBLANE))
    tm_budget = max(_SUBLANE, min(tm_budget, m_aligned))
    tm_budget = (tm_budget // _SUBLANE) * _SUBLANE
    if m_aligned <= tm_budget:
        return m_aligned, m_aligned
    # Prefer an exactly-dividing tile (avoids the extra HBM pass of jnp.pad).
    lo = max(_SUBLANE, (int(tm_budget * 0.88) // _SUBLANE) * _SUBLANE)
    cand = tm_budget
    while cand >= lo:
        if m % cand == 0:
            return cand, m
        cand -= _SUBLANE
    n_blocks = -(-m // tm_budget)
    return tm_budget, n_blocks * tm_budget


def mlp_forward(x, weights, biases, *, activation="identity",
                activation_after_last_layer=False, batch_tile=None,
                compute_dtype=None, x_buffer_count=2, vmem_budget_bytes=None):
    """Fused Pallas MLP forward.

    x: (..., input_features).  weights[i]: (out_i, in_i) (PyTorch Linear layout),
    biases[i]: (out_i,).  compute_dtype (e.g. jnp.bfloat16) optionally casts the
    weights wrapper-side; in-kernel activations are cast to the *weight* dtype
    before the MXU while accumulation stays f32.
    """
    num_layers = len(weights)
    assert len(biases) == num_layers and num_layers >= 1

    in_features = int(x.shape[-1])
    out_features = int(weights[-1].shape[0])
    lead_shape = x.shape[:-1]

    x2 = x.reshape(-1, in_features)
    m = int(x2.shape[0])

    # Layer widths (PyTorch Linear stores W as (out, in)).
    dims = [in_features] + [int(w.shape[0]) for w in weights]
    out_dims_pad = [_round_up(d, _LANE) for d in dims[1:]]      # lane-dense widths
    in_dims_pad = [in_features] + out_dims_pad[:-1]             # per-layer K dims

    # Pre-transpose + zero-pad weights once, wrapper-side -> (in_pad, out_pad).
    weights_t, biases2d = [], []
    for li, (w, b) in enumerate(zip(weights, biases)):
        wt = jnp.asarray(w).T                                   # (in, out)
        if compute_dtype is not None:
            wt = wt.astype(compute_dtype)
        pad_k = in_dims_pad[li] - wt.shape[0]
        pad_n = out_dims_pad[li] - wt.shape[1]
        if pad_k or pad_n:
            wt = jnp.pad(wt, ((0, pad_k), (0, pad_n)))
        weights_t.append(wt)
        b2 = jnp.asarray(b).reshape(1, -1)
        pad_n = out_dims_pad[li] - b2.shape[1]
        if pad_n:
            b2 = jnp.pad(b2, ((0, 0), (0, pad_n)))
        biases2d.append(b2)

    act_itemsize = jnp.dtype(x.dtype).itemsize
    weight_bytes = sum(int(a.size) * jnp.dtype(a.dtype).itemsize
                       for a in weights_t + biases2d)

    vmem_cap = _vmem_capacity_bytes()
    budget = int(vmem_budget_bytes) if vmem_budget_bytes else int(0.85 * vmem_cap)
    if weight_bytes > int(0.7 * budget):
        # TODO(synk): stream weights per layer (pltpu.emit_pipeline over K/N
        # tiles) instead of keeping all layers VMEM-resident; needed for very
        # wide MLPs, especially on v7x (64 MiB VMEM per TensorCore).
        raise ValueError(
            f"resident weights ({weight_bytes} B) exceed 70% of the VMEM budget "
            f"({budget} B); weight streaming is not implemented")

    padded_dims = [in_features] + out_dims_pad
    if batch_tile is None:
        tm_budget = _choose_row_budget(in_features, padded_dims, act_itemsize,
                                       weight_bytes, budget)
        tm, m_pad = _pick_row_tile(m, tm_budget)
    else:
        tm = max(_SUBLANE, _round_up(int(batch_tile), _SUBLANE))
        tm = min(tm, _round_up(m, _SUBLANE))
        m_pad = -(-m // tm) * tm

    n_blocks = m_pad // tm
    if m_pad != m:
        # Zero-pad the row tail (finite through all supported activations);
        # padded rows are sliced off after the call.
        x2 = jnp.pad(x2, ((0, m_pad - m), (0, 0)))

    kernel = _make_mlp_kernel(num_layers, activation, activation_after_last_layer)

    # x/out are tiled over rows; weights/biases are grid-invariant, so keep a
    # single whole-array copy resident in VMEM (no double-buffering, no per-step
    # DMA).  Optional depth>2 pipelining on the activation tile.
    x_spec_kwargs = {}
    if x_buffer_count and int(x_buffer_count) > 2:
        x_spec_kwargs["pipeline_mode"] = pl.Buffered(int(x_buffer_count))
    in_specs = [pl.BlockSpec((tm, in_features), lambda i: (i, 0), **x_spec_kwargs)]
    for _ in range(num_layers):
        in_specs.append(pl.BlockSpec(memory_space=pltpu.MemorySpace.VMEM))  # W
        in_specs.append(pl.BlockSpec(memory_space=pltpu.MemorySpace.VMEM))  # b

    out_pad = out_dims_pad[-1]
    out_spec = pl.BlockSpec((tm, out_pad), lambda i: (i, 0))

    args = [x2]
    for w, b in zip(weights_t, biases2d):
        args.append(w)
        args.append(b)

    # Advisory cost estimate for the XLA scheduler (padded math actually run).
    flops = 2 * m_pad * sum(k * n for k, n in zip(padded_dims[:-1], padded_dims[1:]))
    transcendentals = 0
    if activation in ("tanh", "sigmoid"):
        for li in range(num_layers):
            if li < num_layers - 1 or activation_after_last_layer:
                transcendentals += m_pad * out_dims_pad[li]
    bytes_accessed = (m_pad * in_features * act_itemsize + weight_bytes
                      + m_pad * out_pad * act_itemsize)
    cost = pl.CostEstimate(flops=int(flops), transcendentals=int(transcendentals),
                           bytes_accessed=int(bytes_accessed))

    est_vmem = (weight_bytes
                + 2 * tm * in_features * act_itemsize
                + 2 * tm * out_pad * act_itemsize
                + 4 * tm * max(padded_dims) * 4)
    # Clamp only at the per-generation physical capacity (no universal 64 MiB cap).
    vmem_limit_bytes = int(min(vmem_cap, max(2 * est_vmem, 32 * 1024 * 1024)))

    y2 = pl.pallas_call(
        kernel,
        out_shape=jax.ShapeDtypeStruct((m_pad, out_pad), x.dtype),
        grid_spec=pltpu.PrefetchScalarGridSpec(
            num_scalar_prefetch=0,
            grid=(n_blocks,),
            in_specs=in_specs,
            out_specs=out_spec,
        ),
        compiler_params=pltpu.CompilerParams(
            dimension_semantics=("parallel",),   # batch axis shards across TCs
            vmem_limit_bytes=vmem_limit_bytes,
        ),
        cost_estimate=cost,
    )(*args)

    y2 = y2[:m, :out_features]
    return y2.reshape(*lead_shape, out_features)


def init_mlp_params(key, input_features, hidden_layers, output_features,
                    dtype=jnp.float32):
    """Deterministic init matching torch.nn.Linear default (uniform +-1/sqrt(fan_in))."""
    if isinstance(hidden_layers, int):
        hidden_layers = [hidden_layers]
    dims = [input_features] + list(hidden_layers) + [output_features]
    weights, biases = [], []
    for inp, out in zip(dims[:-1], dims[1:]):
        key, kw, kb = jax.random.split(key, 3)
        bound = 1.0 / (inp ** 0.5)
        w = jax.random.uniform(kw, (out, inp), dtype, minval=-bound, maxval=bound)
        b = jax.random.uniform(kb, (out,), dtype, minval=-bound, maxval=bound)
        weights.append(w)
        biases.append(b)
    return weights, biases


def _reference_mlp(x, weights, biases, activation, activation_after_last_layer):
    out = x
    n = len(weights)
    for i in range(n):
        out = out @ weights[i].T + biases[i]
        if i < n - 1 or activation_after_last_layer:
            out = _apply_activation(out, activation)
    return out


if __name__ == "__main__":
    key = jax.random.PRNGKey(0)
    key, kx, kp = jax.random.split(key, 3)

    input_features = 16
    hidden_layers = [32, 24]
    output_features = 8

    # Arbitrary leading dims, like torch.nn.Linear: (2, 8, 16)
    x = jax.random.normal(kx, (2, 8, input_features), dtype=jnp.float32)
    weights, biases = init_mlp_params(kp, input_features, hidden_layers,
                                      output_features)

    # 1) f32 path, auto-chosen (VMEM-budgeted, lane-dense) tiling.
    y = mlp_forward(x, weights, biases, activation="relu",
                    activation_after_last_layer=False)
    y = jax.block_until_ready(y)
    y_ref = _reference_mlp(x, weights, biases, "relu", False)
    assert y.shape == (2, 8, output_features)
    assert jnp.allclose(y, y_ref, atol=1e-5, rtol=1e-5), "f32 mismatch vs reference"

    # 2) Tail-padding path + activation that is nonzero at 0 (sigmoid) to check
    #    the zero-padded hidden columns are exactly harmless: m=24 rows with an
    #    explicit 16-row tile -> grid of 2 steps, 8 padded rows sliced off.
    key, kx3 = jax.random.split(key)
    x3 = jax.random.normal(kx3, (3, 8, input_features), dtype=jnp.float32)
    y3 = mlp_forward(x3, weights, biases, activation="sigmoid",
                     activation_after_last_layer=True, batch_tile=16)
    y3 = jax.block_until_ready(y3)
    y3_ref = _reference_mlp(x3, weights, biases, "sigmoid", True)
    assert y3.shape == (3, 8, output_features)
    assert jnp.allclose(y3, y3_ref, atol=1e-5, rtol=1e-5), "padded-path mismatch"

    # 3) bf16 operands feed the MXU directly (f32 accumulation); compare against
    #    the f32 reference of the bf16 parameters with a loose tolerance.
    xb = x.astype(jnp.bfloat16)
    wb = [w.astype(jnp.bfloat16) for w in weights]
    bb = [b.astype(jnp.bfloat16) for b in biases]
    yb = mlp_forward(xb, wb, bb, activation="relu",
                     activation_after_last_layer=False)
    yb = jax.block_until_ready(yb)
    yb_ref = _reference_mlp(xb.astype(jnp.float32),
                            [w.astype(jnp.float32) for w in wb],
                            [b.astype(jnp.float32) for b in bb], "relu", False)
    assert yb.shape == (2, 8, output_features)
    assert jnp.allclose(yb.astype(jnp.float32), yb_ref, atol=5e-2, rtol=5e-2), \
        "bf16 mismatch vs f32 reference"

    # 4) Opt-in bf16 compute path for f32 inputs (weights cast wrapper-side).
    yc = mlp_forward(x, weights, biases, activation="tanh",
                     activation_after_last_layer=True,
                     compute_dtype=jnp.bfloat16)
    yc = jax.block_until_ready(yc)
    yc_ref = _reference_mlp(x, weights, biases, "tanh", True)
    assert jnp.allclose(yc, yc_ref, atol=5e-2, rtol=5e-2), \
        "compute_dtype=bf16 mismatch vs f32 reference"

    print("KERNEL_OK")
</pallas_src>

<mosaic_0001>
module attributes {stable_mosaic.version = 11 : i64} {
  func.func @kernel(%arg0: i32, %arg1: memref<16x16xf32, #tpu.memory_space<vmem>>, %arg2: memref<16x128xf32, #tpu.memory_space<vmem>>, %arg3: memref<1x128xf32, #tpu.memory_space<vmem>>, %arg4: memref<128x128xf32, #tpu.memory_space<vmem>>, %arg5: memref<1x128xf32, #tpu.memory_space<vmem>>, %arg6: memref<128x128xf32, #tpu.memory_space<vmem>>, %arg7: memref<1x128xf32, #tpu.memory_space<vmem>>, %arg8: memref<16x128xf32, #tpu.memory_space<vmem>>) attributes {dimension_semantics = [#tpu.dimension_semantics<parallel>], iteration_bounds = array<i64: 1>, scalar_prefetch = 0 : i64, scratch_operands = 0 : i64, tpu.core_type = #tpu.core_type<tc>, window_params = [{transform_indices = @transform_0, window_bounds = array<i64: 16, 16>}, {pipeline_mode = #tpu.pipeline_mode<synchronous>, transform_indices = @transform_1, window_bounds = array<i64: 16, 128>}, {pipeline_mode = #tpu.pipeline_mode<synchronous>, transform_indices = @transform_2, window_bounds = array<i64: 1, 128>}, {pipeline_mode = #tpu.pipeline_mode<synchronous>, transform_indices = @transform_3, window_bounds = array<i64: 128, 128>}, {pipeline_mode = #tpu.pipeline_mode<synchronous>, transform_indices = @transform_4, window_bounds = array<i64: 1, 128>}, {pipeline_mode = #tpu.pipeline_mode<synchronous>, transform_indices = @transform_5, window_bounds = array<i64: 128, 128>}, {pipeline_mode = #tpu.pipeline_mode<synchronous>, transform_indices = @transform_6, window_bounds = array<i64: 1, 128>}, {transform_indices = @transform_7, window_bounds = array<i64: 16, 128>}]} {
    %c0 = arith.constant 0 : index
    %c0_0 = arith.constant 0 : index
    %0 = vector.load %arg1[%c0, %c0_0] : memref<16x16xf32, #tpu.memory_space<vmem>>, vector<16x16xf32>
    %c0_1 = arith.constant 0 : index
    %c0_2 = arith.constant 0 : index
    %1 = vector.load %arg2[%c0_1, %c0_2] : memref<16x128xf32, #tpu.memory_space<vmem>>, vector<16x128xf32>
    %c0_3 = arith.constant 0 : index
    %c0_4 = arith.constant 0 : index
    %2 = vector.load %arg3[%c0_3, %c0_4] : memref<1x128xf32, #tpu.memory_space<vmem>>, vector<1x128xf32>
    %cst = arith.constant dense<0.000000e+00> : vector<16x128xf32>
    %3 = tpu.matmul %0, %1, %cst {dimension_numbers = #tpu.dot_dimension_numbers<[1], [0], [0], [1], [0, 0, 1, 1], [], []>} : vector<16x16xf32>, vector<16x128xf32>, vector<16x128xf32> -> vector<16x128xf32>
    %4 = vector.broadcast %2 : vector<1x128xf32> to vector<16x128xf32>
    %5 = arith.addf %3, %4 : vector<16x128xf32>
    %cst_5 = arith.constant 0.000000e+00 : f32
    %6 = vector.broadcast %cst_5 : f32 to vector<16x128xf32>
    %7 = arith.maximumf %5, %6 : vector<16x128xf32>
    %c0_6 = arith.constant 0 : index
    %c0_7 = arith.constant 0 : index
    %8 = vector.load %arg4[%c0_6, %c0_7] : memref<128x128xf32, #tpu.memory_space<vmem>>, vector<128x128xf32>
    %c0_8 = arith.constant 0 : index
    %c0_9 = arith.constant 0 : index
    %9 = vector.load %arg5[%c0_8, %c0_9] : memref<1x128xf32, #tpu.memory_space<vmem>>, vector<1x128xf32>
    %cst_10 = arith.constant dense<0.000000e+00> : vector<16x128xf32>
    %10 = tpu.matmul %7, %8, %cst_10 {dimension_numbers = #tpu.dot_dimension_numbers<[1], [0], [0], [1], [0, 0, 1, 1], [], []>} : vector<16x128xf32>, vector<128x128xf32>, vector<16x128xf32> -> vector<16x128xf32>
    %11 = vector.broadcast %9 : vector<1x128xf32> to vector<16x128xf32>
    %12 = arith.addf %10, %11 : vector<16x128xf32>
    %cst_11 = arith.constant 0.000000e+00 : f32
    %13 = vector.broadcast %cst_11 : f32 to vector<16x128xf32>
    %14 = arith.maximumf %12, %13 : vector<16x128xf32>
    %c0_12 = arith.constant 0 : index
    %c0_13 = arith.constant 0 : index
    %15 = vector.load %arg6[%c0_12, %c0_13] : memref<128x128xf32, #tpu.memory_space<vmem>>, vector<128x128xf32>
    %c0_14 = arith.constant 0 : index
    %c0_15 = arith.constant 0 : index
    %16 = vector.load %arg7[%c0_14, %c0_15] : memref<1x128xf32, #tpu.memory_space<vmem>>, vector<1x128xf32>
    %cst_16 = arith.constant dense<0.000000e+00> : vector<16x128xf32>
    %17 = tpu.matmul %14, %15, %cst_16 {dimension_numbers = #tpu.dot_dimension_numbers<[1], [0], [0], [1], [0, 0, 1, 1], [], []>} : vector<16x128xf32>, vector<128x128xf32>, vector<16x128xf32> -> vector<16x128xf32>
    %18 = vector.broadcast %16 : vector<1x128xf32> to vector<16x128xf32>
    %19 = arith.addf %17, %18 : vector<16x128xf32>
    %c0_17 = arith.constant 0 : index
    %c0_18 = arith.constant 0 : index
    %20 = vector.load %arg8[%c0_17, %c0_18] : memref<16x128xf32, #tpu.memory_space<vmem>>, vector<16x128xf32>
    tpu.vector_store %arg8[%c0_17, %c0_18], %19 {strides = array<i32>} : memref<16x128xf32, #tpu.memory_space<vmem>>, vector<16x128xf32>,
    return
  }
  func.func @transform_0(%arg0: i32) -> (i32, i32) {
    %c0_i32 = arith.constant 0 : i32
    %c0_i32_0 = arith.constant 0 : i32
    return %arg0, %c0_i32 : i32, i32
  }
  func.func @transform_1(%arg0: i32) -> (i32, i32) {
    %c0_i32 = arith.constant 0 : i32
    %c0_i32_0 = arith.constant 0 : i32
    %c0_i32_1 = arith.constant 0 : i32
    return %c0_i32, %c0_i32_0 : i32, i32
  }
  func.func @transform_2(%arg0: i32) -> (i32, i32) {
    %c0_i32 = arith.constant 0 : i32
    %c0_i32_0 = arith.constant 0 : i32
    %c0_i32_1 = arith.constant 0 : i32
    return %c0_i32, %c0_i32_0 : i32, i32
  }
  func.func @transform_3(%arg0: i32) -> (i32, i32) {
    %c0_i32 = arith.constant 0 : i32
    %c0_i32_0 = arith.constant 0 : i32
    %c0_i32_1 = arith.constant 0 : i32
    return %c0_i32, %c0_i32_0 : i32, i32
  }
  func.func @transform_4(%arg0: i32) -> (i32, i32) {
    %c0_i32 = arith.constant 0 : i32
    %c0_i32_0 = arith.constant 0 : i32
    %c0_i32_1 = arith.constant 0 : i32
    return %c0_i32, %c0_i32_0 : i32, i32
  }
  func.func @transform_5(%arg0: i32) -> (i32, i32) {
    %c0_i32 = arith.constant 0 : i32
    %c0_i32_0 = arith.constant 0 : i32
    %c0_i32_1 = arith.constant 0 : i32
    return %c0_i32, %c0_i32_0 : i32, i32
  }
  func.func @transform_6(%arg0: i32) -> (i32, i32) {
    %c0_i32 = arith.constant 0 : i32
    %c0_i32_0 = arith.constant 0 : i32
    %c0_i32_1 = arith.constant 0 : i32
    return %c0_i32, %c0_i32_0 : i32, i32
  }
  func.func @transform_7(%arg0: i32) -> (i32, i32) {
    %c0_i32 = arith.constant 0 : i32
    %c0_i32_0 = arith.constant 0 : i32
    return %arg0, %c0_i32 : i32, i32
  }
}

</mosaic_0001>

<bundles_post_ra>
// kernel: tpu_custom_call.1
= control target key start
LH: loop header
LB: loop body
LE: loop exit
PB: predicated region body
PF: predicated region fallthrough
CT: control target
= control target key end

     0   :  { %12 = vsyncpa [#allocation3], 0  ;;  %s501_s0 = inlined_call_operand.hbm [shape: f32[16,16], index: 0, kind: input, shape index: {}]   ;;  %s502_s1 = inlined_call_operand.hbm [shape: f32[16,128], index: 1, kind: input, shape index: {}]   ;;  %s503_s2 = inlined_call_operand.vmem [shape: f32[1,128], index: 2, kind: input, shape index: {}]   ;;  %s504_s3 = inlined_call_operand.hbm [shape: f32[128,128], index: 3, kind: input, shape index: {}]   ;;  %s505_s4 = inlined_call_operand.vmem [shape: f32[1,128], index: 4, kind: input, shape index: {}]   ;;  %s506_s5 = inlined_call_operand.hbm [shape: f32[128,128], index: 5, kind: input, shape index: {}]   ;;  %s507_s6 = inlined_call_operand.vmem [shape: f32[1,128], index: 6, kind: input, shape index: {}]   ;;  %s508_s7 = inlined_call_operand.hbm [shape: f32[16,128], index: 7, kind: output, shape index: {}]  }
   0x1   :  { %13 = vsyncpa [#allocation6], 0 }
   0x2   :  { %14 = vsyncpa [#allocation9], 0 }
   0x3   :  { %15 = vsyncpa [#allocation4], 0  ;;  %s33_s26 = sshll.u32 %s502_s1, 4  ;;  %s413_s27 = smov [#allocation5]   ;;  %s34_s26 = int_to_ptr.hbm [resolvable:$true] %s33_s26 }
   0x4   :  { %s35_s28 = sshll.u32 %s413_s27, 4  ;;  %s20_s8 = sshll.u32 %s501_s0, 4  ;;  %s36_s28 = int_to_ptr.vmem [resolvable:$true] %s35_s28  ;;  %s21_s8 = int_to_ptr.hbm [resolvable:$true] %s20_s8 }
   0x5   :  { %s414_s9 = smov 128   ;;  %s415_s10 = smov 8  }
   0x6   :  { %41 = dma.hbm_to_vmem [thread:$0]  %s34_s26, 256, %s36_s28, [#allocation6], %s414_s9, %s414_s9, %s415_s10  }
   0x7   :  { %s416_s11 = smov [#allocation2]   ;;  %s48_s1 = sshll.u32 %s504_s3, 4  ;;  %s49_s1 = int_to_ptr.hbm [resolvable:$true] %s48_s1 }
   0x8   :  { %s22_s12 = sshll.u32 %s416_s11, 4  ;;  %s63_s16 = sshll.u32 %s506_s5, 4  ;;  %s23_s12 = int_to_ptr.vmem [resolvable:$true] %s22_s12  ;;  %s64_s16 = int_to_ptr.hbm [resolvable:$true] %s63_s16 }
   0x9   :  { %28 = dma.hbm_to_vmem [thread:$0]  %s21_s8, 256, %s23_s12, [#allocation3], %s414_s9, %s414_s9, %s415_s10  }
   0xa   :  { %s417_s17 = smov [#allocation7]   ;;  %s418_s19 = smov [#allocation8]  }
   0xb   :  { %s50_s18 = sshll.u32 %s417_s17, 4  ;;  %s65_s3 = sshll.u32 %s418_s19, 4  ;;  %s51_s18 = int_to_ptr.vmem [resolvable:$true] %s50_s18  ;;  %s66_s3 = int_to_ptr.vmem [resolvable:$true] %s65_s3 }
   0xc   :  { %56 = dma.hbm_to_vmem [thread:$0]  %s49_s1, 2048, %s51_s18, [#allocation6], %s414_s9, %s414_s9, %s415_s10  }
   0xd   :  { %71 = dma.hbm_to_vmem [thread:$0]  %s64_s16, 2048, %s66_s3, [#allocation9], %s414_s9, %s414_s9, %s415_s10  }
   0xe   :  { %405 = dma.done.wait [#allocation3], 256  }
   0xf   :  { %406 = vsyncadd [#allocation3], 4294967040 }
  0x10   :  { %407 = dma.done.wait [#allocation6], 2304  }
  0x11   :  { %408 = vsyncadd [#allocation6], 4294964992 }
  0x12   :  { %409 = dma.done.wait [#allocation9], 2048  }
  0x13   :  { %410 = vsyncadd [#allocation9], 4294965248  ;;  %v93_v0 = vld [vmem:[#allocation5 + $0x8] sm:$0xff]  ;;  %v92_v1 = vld [vmem:[#allocation5] sm:$0xff]  ;;  %vm98_vm0 = vcmask 130048   ;;  %s419_s24 = smov [#allocation10]  }
  0x14   :  { %119 = vmatpush.msra.mxu0 %v93_v0  ;;  %v90_v2 = vld [vmem:[#allocation2] sm:$0xff]  ;;  %v145_v3 = vld [vmem:[#allocation7 + $0x78] sm:$0xff]  ;;  %v144_v4 = vld [vmem:[#allocation7 + $0x70] sm:$0xff]  ;;  %s224_s25 = sshll.u32 %s419_s24, 4  ;;  %s225_s25 = int_to_ptr.vmem [resolvable:$true] %s224_s25 }
  0x15   :  { %150 = vmatpush.msra.mxu1 %v145_v3  ;;  %243 = vmatpush.msra.mxu3 %v145_v3  ;;  %v143_v5 = vld [vmem:[#allocation7 + $0x68] sm:$0xff]  ;;  %v142_v6 = vld [vmem:[#allocation7 + $0x60] sm:$0xff]  ;;  %v141_v7 = vld [vmem:[#allocation7 + $0x58] sm:$0xff] }
  0x16   :  { %120 = vmatpush.msra.mxu0 %v92_v1  ;;  %v91_v8 = vld [vmem:[#allocation2 + $0x8] sm:$0xff]  ;;  %v140_v9 = vld [vmem:[#allocation7 + $0x50] sm:$0xff]  ;;  %v138_v11 = vld [vmem:[#allocation7 + $0x40] sm:$0xff] }
  0x17   :  { %241 = vmatmul.msk.f32.vlgmr.msra.gmra.mxu0 %vm98_vm0, %v90_v2  ;;  %151 = vmatpush.msra.mxu1 %v144_v4  ;;  %v139_v10 = vld [vmem:[#allocation7 + $0x48] sm:$0xff]  ;;  %v137_v12 = vld [vmem:[#allocation7 + $0x38] sm:$0xff]  ;;  %v136_v13 = vld [vmem:[#allocation7 + $0x30] sm:$0xff] }
  0x18   :  { %244 = vmatpush.msra.mxu3 %v144_v4  ;;  %v135_v14 = vld [vmem:[#allocation7 + $0x28] sm:$0xff]  ;;  %v134_v15 = vld [vmem:[#allocation7 + $0x20] sm:$0xff]  ;;  %v133_v16 = vld [vmem:[#allocation7 + $0x18] sm:$0xff] }
  0x19   :  { %152 = vmatpush.msra.mxu1 %v143_v5  ;;  %v132_v17 = vld [vmem:[#allocation7 + $0x10] sm:$0xff]  ;;  %v131_v18 = vld [vmem:[#allocation7 + $0x8] sm:$0xff]  ;;  %v130_v19 = vld [vmem:[#allocation7] sm:$0xff] }
  0x1a   :  { %245 = vmatpush.msra.mxu3 %v143_v5  ;;  %v190_v20 = vld [vmem:[#allocation8 + $0x78] sm:$0xff]  ;;  %v189_v21 = vld [vmem:[#allocation8 + $0x70] sm:$0xff]  ;;  %v188_v22 = vld [vmem:[#allocation8 + $0x68] sm:$0xff] }
  0x1b   :  { %153 = vmatpush.msra.mxu1 %v142_v6  ;;  %195 = vmatpush.msrb.mxu0 %v190_v20  ;;  %v187_v23 = vld [vmem:[#allocation8 + $0x60] sm:$0xff]  ;;  %v186_v24 = vld [vmem:[#allocation8 + $0x58] sm:$0xff]  ;;  %v185_v25 = vld [vmem:[#allocation8 + $0x50] sm:$0xff] }
  0x1c   :  { %246 = vmatpush.msra.mxu3 %v142_v6  ;;  %259 = vmatpush.msra.mxu2 %v190_v20  ;;  %v184_v26 = vld [vmem:[#allocation8 + $0x48] sm:$0xff]  ;;  %v183_v27 = vld [vmem:[#allocation8 + $0x40] sm:$0xff]  ;;  %v182_v28 = vld [vmem:[#allocation8 + $0x38] sm:$0xff] }
  0x1d   :  { %154 = vmatpush.msra.mxu1 %v141_v7  ;;  %196 = vmatpush.msrb.mxu0 %v189_v21  ;;  %v282_v29 = vld [vmem:[%s503_s2] ss:$0 sm:$0xff]  ;;  %v181_v30 = vld [vmem:[#allocation8 + $0x30] sm:$0xff]  ;;  %v180_v31 = vld [vmem:[#allocation8 + $0x28] sm:$0xff] }
  0x1e   :  { %247 = vmatpush.msra.mxu3 %v141_v7  ;;  %260 = vmatpush.msra.mxu2 %v189_v21  ;;  %v179_v34 = vld [vmem:[#allocation8 + $0x20] sm:$0xff]  ;;  %v178_v36 = vld [vmem:[#allocation8 + $0x18] sm:$0xff]  ;;  %v177_v40 = vld [vmem:[#allocation8 + $0x10] sm:$0xff] }
  0x1f   :  { %242 = vmatmul.msk.f32.gmra.mxu0 %vm98_vm0, %v91_v8  ;;  %155 = vmatpush.msra.mxu1 %v140_v9  ;;  %v176_v41 = vld [vmem:[#allocation8 + $0x8] sm:$0xff]  ;;  %v175_v42 = vld [vmem:[#allocation8] sm:$0xff] }
  0x20   :  { %248 = vmatpush.msra.mxu3 %v140_v9  ;;  %197 = vmatpush.msrb.mxu0 %v188_v22  ;;  %v283_v43 = vld [vmem:[%s505_s4] ss:$0 sm:$0xff]  ;;  %s226_s4 = sshll.u32 %s508_s7, 4  ;;  %s227_s4 = int_to_ptr.hbm [resolvable:$true] %s226_s4 }
  0x21   :  { %156 = vmatpush.msra.mxu1 %v139_v10  ;;  %261 = vmatpush.msra.mxu2 %v188_v22  ;;  %v284_v50 = vld [vmem:[%s507_s6] ss:$0 sm:$0xff] }
  0x22   :  { %249 = vmatpush.msra.mxu3 %v139_v10  ;;  %198 = vmatpush.msrb.mxu0 %v187_v23 }
  0x23   :  { %157 = vmatpush.msra.mxu1 %v138_v11  ;;  %262 = vmatpush.msra.mxu2 %v187_v23 }
  0x24   :  { %250 = vmatpush.msra.mxu3 %v138_v11  ;;  %199 = vmatpush.msrb.mxu0 %v186_v24 }
  0x25   :  { %158 = vmatpush.msra.mxu1 %v137_v12  ;;  %263 = vmatpush.msra.mxu2 %v186_v24 }
  0x26   :  { %251 = vmatpush.msra.mxu3 %v137_v12  ;;  %200 = vmatpush.msrb.mxu0 %v185_v25 }
  0x27   :  { %159 = vmatpush.msra.mxu1 %v136_v13  ;;  %264 = vmatpush.msra.mxu2 %v185_v25 }
  0x28   :  { %252 = vmatpush.msra.mxu3 %v136_v13  ;;  %201 = vmatpush.msrb.mxu0 %v184_v26 }
  0x29   :  { %160 = vmatpush.msra.mxu1 %v135_v14  ;;  %265 = vmatpush.msra.mxu2 %v184_v26 }
  0x2a   :  { %253 = vmatpush.msra.mxu3 %v135_v14  ;;  %202 = vmatpush.msrb.mxu0 %v183_v27 }
  0x2b   :  { %161 = vmatpush.msra.mxu1 %v134_v15  ;;  %266 = vmatpush.msra.mxu2 %v183_v27 }
  0x2c   :  { %254 = vmatpush.msra.mxu3 %v134_v15  ;;  %203 = vmatpush.msrb.mxu0 %v182_v28 }
  0x2d   :  { %162 = vmatpush.msra.mxu1 %v133_v16  ;;  %267 = vmatpush.msra.mxu2 %v182_v28 }
  0x2e   :  { %255 = vmatpush.msra.mxu3 %v133_v16  ;;  %204 = vmatpush.msrb.mxu0 %v181_v30 }
  0x2f   :  { %163 = vmatpush.msra.mxu1 %v132_v17  ;;  %268 = vmatpush.msra.mxu2 %v181_v30 }
  0x30   :  { %256 = vmatpush.msra.mxu3 %v132_v17  ;;  %205 = vmatpush.msrb.mxu0 %v180_v31 }
  0x31   :  { %164 = vmatpush.msra.mxu1 %v131_v18  ;;  %269 = vmatpush.msra.mxu2 %v180_v31 }
  0x32   :  { %257 = vmatpush.msra.mxu3 %v131_v18  ;;  %206 = vmatpush.msrb.mxu0 %v179_v34 }
  0x33   :  { %165 = vmatpush.msra.mxu1 %v130_v19  ;;  %270 = vmatpush.msra.mxu2 %v179_v34 }
  0x34   :  { %258 = vmatpush.msra.mxu3 %v130_v19  ;;  %207 = vmatpush.msrb.mxu0 %v178_v36 }
  0x35   :  { %271 = vmatpush.msra.mxu2 %v178_v36 }
  0x36   :  { %208 = vmatpush.msrb.mxu0 %v177_v40 }
  0x37   :  { %272 = vmatpush.msra.mxu2 %v177_v40 }
  0x38   :  { %209 = vmatpush.msrb.mxu0 %v176_v41 }
  0x39   :  { %273 = vmatpush.msra.mxu2 %v176_v41 }
  0x3a   :  { %210 = vmatpush.msrb.mxu0 %v175_v42 }
  0x3b   :  { %274 = vmatpush.msra.mxu2 %v175_v42 }
  0x94   :  { %v122_v32 = vpop.f32.mrf.mxu0 }
  0x95   :  { %v123_v33 = vadd.f32 %v282_v29, %v122_v32 }
  0x97   :  { %v128_v35 = vmax.f32 %v123_v33, 0.0 }
  0x99   :  { %166 = vmatmul.f32.vlgmr.msra.gmra.mxu1 %v128_v35 }
  0x9c   :  { %v125_v37 = vpop.f32.mrf.mxu0 }
  0x9d   :  { %v126_v38 = vadd.f32 %v282_v29, %v125_v37 }
  0x9f   :  { %v129_v39 = vmax.f32 %v126_v38, 0.0 }
  0xa1   :  { %169 = vmatmul.f32.vlgmr.msra.gmra.mxu3 %v129_v39 }
 0x116   :  { %v167_v44 = vpop.f32.mrf.mxu1 }
 0x117   :  { %v168_v45 = vadd.f32 %v283_v43, %v167_v44 }
 0x119   :  { %v173_v46 = vmax.f32 %v168_v45, 0.0 }
 0x11b   :  { %211 = vmatmul.f32.vlgmr.msrb.gmra.mxu0 %v173_v46 }
 0x124   :  { %v170_v47 = vpop.f32.mrf.mxu3 }
 0x125   :  { %v171_v48 = vadd.f32 %v283_v43, %v170_v47 }
 0x127   :  { %v174_v49 = vmax.f32 %v171_v48, 0.0 }
 0x129   :  { %214 = vmatmul.f32.vlgmr.msra.gmra.mxu2 %v174_v49 }
 0x198   :  { %v212_v51 = vpop.f32.mrf.mxu0 }
 0x199   :  { %v213_v52 = vadd.f32 %v284_v50, %v212_v51 }
 0x19b   :  { %218 = vst [vmem:[#allocation10] sm:$0xff] %v213_v52 }
 0x1ac   :  { %v215_v53 = vpop.f32.mrf.mxu2 }
 0x1ad   :  { %v216_v54 = vadd.f32 %v284_v50, %v215_v53 }
 0x1af   :  { %219 = vst [vmem:[#allocation10 + $0x8] sm:$0xff] %v216_v54 }
 0x1b0   :  { %232 = dma.vmem_to_hbm [thread:$0]  %s225_s25, 256, %s227_s4, [#allocation4], %s414_s9, %s414_s9, %s415_s10  }
 0x1b1   :  { %411 = dma.done.wait [#allocation4], 256  }
 0x1b2   :  { %412 = vsyncadd [#allocation4], 4294967040 }
 0x1b3   :  { %237 = vsyncpa [#allocation3], 1 }
 0x1b4   :  { %238 = vsyncpa [#allocation6], 1 }
 0x1b5   :  { %239 = vsyncpa [#allocation9], 1 }
 0x1b6   :  { %240 = vsyncpa [#allocation4], 1 }

</bundles_post_ra>
